<compile_context>
chip_gen: v5e
topology: v5e:2x2
jax: 0.10.0
libtpu: 0.0.40
codegen_flags: <defaults>
</compile_context>

<pallas_src>
import math

import jax
import jax.numpy as jnp
import numpy as np
from jax.experimental import pallas as pl
from jax.experimental.pallas import tpu as pltpu

_LANE = 128  # TPU lane width.


def _dlinear_kernel(w_ref, b_ref, x_ref, o_ref):
    """One N-tile of  out = W_eff @ X + b_eff.

    w_ref : [P, L]   folded weight (f32, grid-resident)
    b_ref : [P, 1]   folded bias   (f32, grid-resident)
    x_ref : [L, TN]  lane-dense activation tile (f32 or bf16)
    o_ref : [P, TN]  lane-dense output tile (f32)
    """
    acc = jnp.dot(w_ref[...].astype(jnp.float32),
                  x_ref[...].astype(jnp.float32),
                  preferred_element_type=jnp.float32)
    o_ref[...] = (acc + b_ref[...]).astype(o_ref.dtype)


def _moving_avg_matrix(seq_len, kernel_size):
    """[L, L] matrix M such that trend = M @ x reproduces the PyTorch
    edge-replication padding + AvgPool1d(kernel_size, stride=1)."""
    pad = (kernel_size - 1) // 2
    m = np.zeros((seq_len, seq_len), np.float64)
    for i in range(seq_len):
        for j in range(-pad, pad + 1):
            m[i, min(max(i + j, 0), seq_len - 1)] += 1.0 / kernel_size
    return m.astype(np.float32)


class DLinearPallas:
    def __init__(self, seq_len, pred_len, label_len, moving_avg, enc_in,
                 individual=False, x_dtype=jnp.bfloat16,
                 key=jax.random.PRNGKey(0)):
        # TODO(synk): individual=True (per-channel heads) not implemented; the
        # shared-head path below matches the module's default configuration.
        assert not individual, "individual=False only (shared heads)"
        assert moving_avg % 2 == 1, "kernel_size must be odd (length-preserving)"
        self.seq_len = seq_len
        self.pred_len = pred_len
        self.label_len = label_len
        self.kernel_size = moving_avg
        self.channels = enc_in
        self.x_dtype = np.dtype(x_dtype)          # activation-slab dtype (bf16 default)
        self._ma = jnp.asarray(_moving_avg_matrix(seq_len, moving_avg))
        self._fwd = jax.jit(self._forward)        # one jit so input fusion can apply

        # PyTorch init: weights = (1/seq_len) * ones; biases = nn.Linear default
        # U(-1/sqrt(in), 1/sqrt(in)), reproduced deterministically from `key`.
        k1, k2 = jax.random.split(key)
        bound = 1.0 / math.sqrt(seq_len)
        self.set_weights(
            jnp.full((pred_len, seq_len), 1.0 / seq_len, jnp.float32),
            jnp.full((pred_len, seq_len), 1.0 / seq_len, jnp.float32),
            jax.random.uniform(k1, (pred_len,), jnp.float32, minval=-bound, maxval=bound),
            jax.random.uniform(k2, (pred_len,), jnp.float32, minval=-bound, maxval=bound),
        )

    def set_weights(self, w_seasonal, w_trend, b_seasonal, b_trend):
        """Store raw (PyTorch-equivalent) weights and refresh the exact fold."""
        self.w_seasonal = jnp.asarray(w_seasonal, jnp.float32)
        self.w_trend = jnp.asarray(w_trend, jnp.float32)
        self.b_seasonal = jnp.asarray(b_seasonal, jnp.float32)
        self.b_trend = jnp.asarray(b_trend, jnp.float32)
        # Exact algebraic fold (done once, outside the hot path):
        self.w_eff = self.w_seasonal + (self.w_trend - self.w_seasonal) @ self._ma
        self.b_eff = (self.b_seasonal + self.b_trend).reshape(self.pred_len, 1)

    # ---- tile selection (trace-time Python, shapes are concrete) -------------
    def _pick_tile(self, n):
        L, P = self.seq_len, self.pred_len
        n_lanes = max(_LANE, pl.cdiv(n, _LANE) * _LANE)
        x_bytes = self.x_dtype.itemsize
        # Double-buffered X and O tile bytes per output column.
        per_col = 2 * (L * x_bytes + P * 4)
        budget = 20 << 20                        # pipelined-buffer budget (v7x-safe)
        tn = max(_LANE, (min(2048, budget // per_col) // _LANE) * _LANE)
        # v7x dual-TC: make sure the parallel grid has >= 2 steps when possible.
        if n_lanes >= 2 * _LANE:
            tn = min(tn, max(_LANE, ((n_lanes // 2) // _LANE) * _LANE))
        tn = min(tn, n_lanes)
        # Explicit VMEM budget: X/O pipeline buffers + (double-buffered) W, b.
        vmem_need = (per_col * tn
                     + 2 * P * L * 4
                     + 2 * ((P + 7) // 8) * 8 * _LANE * 4
                     + (2 << 20))
        vmem_limit = int(min(64 << 20, max(32 << 20, vmem_need)))
        return tn, vmem_limit

    def _forward(self, w_eff, b_eff, x_enc):
        B, L, C = x_enc.shape
        P = self.pred_len
        n = B * C

        # Lane-dense activation slab [L, B*C]; with allow_input_fusion this
        # transpose/reshape/cast fuses into the pallas_call input (no extra
        # materialized HBM pass).
        x2 = jnp.transpose(x_enc, (1, 0, 2)).reshape(L, n).astype(self.x_dtype)

        tn, vmem_limit = self._pick_tile(n)
        grid = (pl.cdiv(n, tn),)                 # ragged last tile handled by Pallas

        out2 = pl.pallas_call(
            _dlinear_kernel,
            out_shape=jax.ShapeDtypeStruct((P, n), jnp.float32),
            grid_spec=pltpu.PrefetchScalarGridSpec(
                num_scalar_prefetch=0,
                grid=grid,
                in_specs=[
                    pl.BlockSpec((P, L), lambda i: (0, 0)),   # W_eff (resident)
                    pl.BlockSpec((P, 1), lambda i: (0, 0)),   # b_eff (resident)
                    pl.BlockSpec((L, tn), lambda i: (0, i)),  # activation tile
                ],
                out_specs=pl.BlockSpec((P, tn), lambda i: (0, i)),
            ),
            compiler_params=pltpu.CompilerParams(
                dimension_semantics=("parallel",),
                vmem_limit_bytes=vmem_limit,
                allow_input_fusion=[False, False, True],
            ),
        )(w_eff, b_eff, x2)

        out = jnp.transpose(out2.reshape(P, B, C), (1, 0, 2))   # [B, P, C]
        # forward() returns dec_out[:, -pred_len:, :] == full output here.
        return out.astype(x_enc.dtype)

    def __call__(self, x_enc, x_mark_enc=None, x_dec=None, x_mark_dec=None):
        B, L, C = x_enc.shape
        assert L == self.seq_len and C == self.channels
        return self._fwd(self.w_eff, self.b_eff, x_enc)


def _reference_forward(model: DLinearPallas, x_enc):
    """Pure-numpy reference using the UNFOLDED path (PyTorch semantics)."""
    x = np.asarray(x_enc, dtype=np.float32)            # [B, L, C]
    B, L, C = x.shape
    k = model.kernel_size
    pad = (k - 1) // 2
    front = np.repeat(x[:, 0:1, :], pad, axis=1)
    end = np.repeat(x[:, -1:, :], pad, axis=1)
    xp = np.concatenate([front, x, end], axis=1)        # [B, L+2p, C]
    trend = np.stack([xp[:, j:j + L, :] for j in range(k)], axis=0).mean(0)
    seasonal = x - trend
    ws = np.asarray(model.w_seasonal); wt = np.asarray(model.w_trend)
    bs = np.asarray(model.b_seasonal); bt = np.asarray(model.b_trend)
    s_out = np.einsum('blc,pl->bcp', seasonal, ws) + bs[None, None, :]
    t_out = np.einsum('blc,pl->bcp', trend, wt) + bt[None, None, :]
    return np.transpose(s_out + t_out, (0, 2, 1))       # [B, P, C]


if __name__ == "__main__":
    B, SEQ_LEN, PRED_LEN, LABEL_LEN, ENC_IN, MA = 2, 16, 8, 4, 4, 5

    key = jax.random.PRNGKey(0)
    k_x, k_params, k_w, k_xl = jax.random.split(key, 4)
    x_enc = jax.random.normal(k_x, (B, SEQ_LEN, ENC_IN), jnp.float32)
    # Unused auxiliary inputs (kept for interface fidelity with forward()).
    x_mark_enc = jnp.zeros((B, SEQ_LEN, 3), jnp.float32)
    x_dec = jnp.zeros((B, LABEL_LEN + PRED_LEN, ENC_IN), jnp.float32)
    x_mark_dec = jnp.zeros((B, LABEL_LEN + PRED_LEN, 3), jnp.float32)

    # --- f32 activations: exact-path checks at tight tolerance ---------------
    model_f32 = DLinearPallas(SEQ_LEN, PRED_LEN, LABEL_LEN, MA, ENC_IN,
                              individual=False, x_dtype=jnp.float32, key=k_params)

    # Check 1: PyTorch default init (Ws == Wt == 1/L ones, random biases).
    out = jax.block_until_ready(model_f32(x_enc, x_mark_enc, x_dec, x_mark_dec))
    np.testing.assert_allclose(np.asarray(out), _reference_forward(model_f32, x_enc),
                               rtol=1e-5, atol=1e-5)

    # Check 2: distinct seasonal/trend weights so the moving-average fold is
    # exercised nontrivially.
    kw1, kw2, kb1, kb2 = jax.random.split(k_w, 4)
    model_f32.set_weights(
        jax.random.normal(kw1, (PRED_LEN, SEQ_LEN), jnp.float32) * 0.1,
        jax.random.normal(kw2, (PRED_LEN, SEQ_LEN), jnp.float32) * 0.1,
        jax.random.normal(kb1, (PRED_LEN,), jnp.float32) * 0.1,
        jax.random.normal(kb2, (PRED_LEN,), jnp.float32) * 0.1,
    )
    out2 = jax.block_until_ready(model_f32(x_enc, x_mark_enc, x_dec, x_mark_dec))
    np.testing.assert_allclose(np.asarray(out2), _reference_forward(model_f32, x_enc),
                               rtol=1e-5, atol=1e-5)

    # Check 3: larger batch -> multi-step parallel grid with a ragged last tile.
    x_big = jax.random.normal(k_xl, (80, SEQ_LEN, ENC_IN), jnp.float32)
    out3 = jax.block_until_ready(model_f32(x_big))
    np.testing.assert_allclose(np.asarray(out3), _reference_forward(model_f32, x_big),
                               rtol=1e-5, atol=1e-5)

    # --- bf16 activations (default, halves X HBM traffic): looser tolerance ---
    model_bf16 = DLinearPallas(SEQ_LEN, PRED_LEN, LABEL_LEN, MA, ENC_IN,
                               individual=False, key=k_params)
    out4 = jax.block_until_ready(model_bf16(x_enc, x_mark_enc, x_dec, x_mark_dec))
    np.testing.assert_allclose(np.asarray(out4), _reference_forward(model_bf16, x_enc),
                               rtol=2e-2, atol=2e-2)

    print("KERNEL_OK")
</pallas_src>

<mosaic_0001>
module attributes {stable_mosaic.version = 11 : i64} {
  func.func @_dlinear_kernel(%arg0: i32, %arg1: memref<8x16xf32, #tpu.memory_space<vmem>>, %arg2: memref<8x1xf32, #tpu.memory_space<vmem>>, %arg3: memref<16x128xf32, #tpu.memory_space<vmem>>, %arg4: memref<8x128xf32, #tpu.memory_space<vmem>>) attributes {dimension_semantics = [#tpu.dimension_semantics<parallel>], iteration_bounds = array<i64: 1>, scalar_prefetch = 0 : i64, scratch_operands = 0 : i64, tpu.core_type = #tpu.core_type<tc>, window_params = [{pipeline_mode = #tpu.pipeline_mode<synchronous>, transform_indices = @transform_0, window_bounds = array<i64: 8, 16>}, {pipeline_mode = #tpu.pipeline_mode<synchronous>, transform_indices = @transform_1, window_bounds = array<i64: 8, 1>}, {transform_indices = @transform_2, window_bounds = array<i64: 16, 128>}, {transform_indices = @transform_3, window_bounds = array<i64: 8, 128>}]} {
    %c0 = arith.constant 0 : index
    %c0_0 = arith.constant 0 : index
    %0 = vector.load %arg1[%c0, %c0_0] : memref<8x16xf32, #tpu.memory_space<vmem>>, vector<8x16xf32>
    %c0_1 = arith.constant 0 : index
    %c0_2 = arith.constant 0 : index
    %1 = vector.load %arg3[%c0_1, %c0_2] : memref<16x128xf32, #tpu.memory_space<vmem>>, vector<16x128xf32>
    %cst = arith.constant dense<0.000000e+00> : vector<8x128xf32>
    %2 = tpu.matmul %0, %1, %cst {dimension_numbers = #tpu.dot_dimension_numbers<[1], [0], [0], [1], [0, 0, 1, 1], [], []>} : vector<8x16xf32>, vector<16x128xf32>, vector<8x128xf32> -> vector<8x128xf32>
    %c0_3 = arith.constant 0 : index
    %c0_4 = arith.constant 0 : index
    %3 = vector.load %arg2[%c0_3, %c0_4] : memref<8x1xf32, #tpu.memory_space<vmem>>, vector<8x1xf32>
    %4 = vector.broadcast %3 : vector<8x1xf32> to vector<8x128xf32>
    %5 = arith.addf %2, %4 : vector<8x128xf32>
    %c0_5 = arith.constant 0 : index
    %c0_6 = arith.constant 0 : index
    %6 = vector.load %arg4[%c0_5, %c0_6] : memref<8x128xf32, #tpu.memory_space<vmem>>, vector<8x128xf32>
    tpu.vector_store %arg4[%c0_5, %c0_6], %5 {strides = array<i32>} : memref<8x128xf32, #tpu.memory_space<vmem>>, vector<8x128xf32>,
    return
  }
  func.func @transform_0(%arg0: i32) -> (i32, i32) {
    %c0_i32 = arith.constant 0 : i32
    %c0_i32_0 = arith.constant 0 : i32
    %c0_i32_1 = arith.constant 0 : i32
    return %c0_i32, %c0_i32_0 : i32, i32
  }
  func.func @transform_1(%arg0: i32) -> (i32, i32) {
    %c0_i32 = arith.constant 0 : i32
    %c0_i32_0 = arith.constant 0 : i32
    %c0_i32_1 = arith.constant 0 : i32
    return %c0_i32, %c0_i32_0 : i32, i32
  }
  func.func @transform_2(%arg0: i32) -> (i32, i32) {
    %c0_i32 = arith.constant 0 : i32
    %c0_i32_0 = arith.constant 0 : i32
    return %c0_i32, %arg0 : i32, i32
  }
  func.func @transform_3(%arg0: i32) -> (i32, i32) {
    %c0_i32 = arith.constant 0 : i32
    %c0_i32_0 = arith.constant 0 : i32
    return %c0_i32, %arg0 : i32, i32
  }
}

</mosaic_0001>

<bundles_post_ra>
// kernel: _forward.1
= control target key start
LH: loop header
LB: loop body
LE: loop exit
PB: predicated region body
PF: predicated region fallthrough
CT: control target
= control target key end

     0   :  { %v55_v2 = vmov 0   ;;  %vm23_vm0 = vcmask 130048   ;;  %s91_s2 = inlined_call_operand.vmem [shape: f32[16,8], index: 2, kind: input, shape index: {}]   ;;  %s92_s0 = inlined_call_operand.vmem [shape: f32[8,16], index: 0, kind: input, shape index: {}]   ;;  %s93_s1 = inlined_call_operand.vmem [shape: f32[8,1], index: 1, kind: input, shape index: {}]   ;;  %s94_s3 = inlined_call_operand.vmem [shape: f32[8,8], index: 3, kind: output, shape index: {}]  }
   0x1   :  { %v16_v0 = vld [vmem:[%s91_s2 + $0x8] sm:$0xff]  ;;  %v15_v1 = vld [vmem:[%s91_s2] sm:$0xff]  ;;  %54 = vset.pattern.permute.xlu0 %v55_v2 }
   0x2   :  { %41 = vmatpush.msra.mxu0 %v16_v0  ;;  %v14_v3 = vld [vmem:[%s92_s0] sm:$0xff] }
   0x3   :  { %v17_v4 = vld [vmem:[%s93_s1] sm:$0xff] }
   0x4   :  { %20 = vperm.xlu0 %54, %v17_v4   ;;  %42 = vmatpush.msra.mxu0 %v15_v1 }
   0x5   :  { %52 = vmatmul.msk.f32.vlgmr.msra.gmra.mxu0 %vm23_vm0, %v14_v3 }
  0x76   :  { %v21_v5 = vpop.permute.xlu0 %20 }
  0x82   :  { %v44_v6 = vpop.f32.mrf.mxu0 }
  0x83   :  { %v45_v7 = vadd.f32 %v44_v6, %v21_v5 }
  0x85   :  { %47 = vst [vmem:[%s94_s3] sm:$0xff] %v45_v7 }

</bundles_post_ra>
